<compile_context>
chip_gen: v7x
topology: tpu7x:2x2x1
jax: 0.10.0
libtpu: 0.0.40
codegen_flags: <defaults>
</compile_context>

<pallas_src>
import math
import jax
import jax.numpy as jnp
from jax.experimental import pallas as pl
from jax.experimental.pallas import tpu as pltpu


def _round_up(x, m):
    return ((x + m - 1) // m) * m


def _choose_tb(batch, tile_b):
    """Pick the per-step batch tile.

    B <= 8: one block equal to the full batch dim (always a legal block shape).
    B  > 8: multiple of 8, ~B/2 so there are >= 2 grid steps (both v7x TCs),
            capped at tile_b (VMEM budget for the f32 x block).
    """
    if batch <= 8:
        return batch
    return max(8, min(tile_b, _round_up(pl.cdiv(batch, 2), 8)))


def mlp_kernel(x_ref, w1_ref, b1_ref, w2_ref, b2_ref,
               w3_ref, b3_ref, w4_ref, b4_ref, o_ref):
    # 4 matmuls + 3 tanh fully fused on one batch tile.
    # f32 operands / f32 accumulation (MXU has slack; workload is HBM-bound).
    h = jnp.tanh(jnp.dot(x_ref[...], w1_ref[...],
                         preferred_element_type=jnp.float32) + b1_ref[...])
    h = jnp.tanh(jnp.dot(h, w2_ref[...],
                         preferred_element_type=jnp.float32) + b2_ref[...])
    h = jnp.tanh(jnp.dot(h, w3_ref[...],
                         preferred_element_type=jnp.float32) + b3_ref[...])
    y = jnp.dot(h, w4_ref[...],
                preferred_element_type=jnp.float32) + b4_ref[...]
    o_ref[...] = y.astype(o_ref.dtype)        # bf16 lane-dense output slab


def mlp_forward(x, params, *, tile_b=1024):
    """x: (B, C, H, W) float32. params: dict of f32 weights/biases.

    Weights are stored (in_features, out_features) so the kernel computes
    y = x @ W + b directly on the MXU.
    """
    B = x.shape[0]
    x2d = x.reshape(B, -1)                      # nn.Flatten (NCHW -> (B, C*H*W))
    d_in = x2d.shape[1]

    w1, b1 = params["w1"], params["b1"]
    w2, b2 = params["w2"], params["b2"]
    w3, b3 = params["w3"], params["b3"]
    w4, b4 = params["w4"], params["b4"]
    hidden = w1.shape[1]
    out_dim = w4.shape[1]

    # ---- lane-dense output: pad final layer to 128 output columns ----------
    out_pad = _round_up(max(out_dim, 128), 128)
    w4p = jnp.pad(w4, ((0, 0), (0, out_pad - out_dim)))
    b4p = jnp.pad(b4, ((0, 0), (0, out_pad - out_dim)))

    # ---- batch tiling: no padding of B; ragged last tile is masked ----------
    tb = _choose_tb(B, tile_b)
    grid = (pl.cdiv(B, tb),)

    const = lambda shape: pl.BlockSpec(shape, lambda i: (0, 0))  # resident operand

    flops = 2 * B * (d_in * hidden + 2 * hidden * hidden + hidden * out_dim)
    bytes_accessed = (x2d.size * 4                    # f32 input read
                      + B * out_pad * 2               # bf16 padded output write
                      + (w1.size + w2.size + w3.size + w4p.size) * 4
                      + (b1.size + b2.size + b3.size + b4p.size) * 4)

    out = pl.pallas_call(
        mlp_kernel,
        out_shape=jax.ShapeDtypeStruct((B, out_pad), jnp.bfloat16),
        grid=grid,
        in_specs=[
            pl.BlockSpec((tb, d_in), lambda i: (i, 0)),   # x: streamed per tile (f32)
            const(w1.shape), const(b1.shape),             # weights/biases: resident
            const(w2.shape), const(b2.shape),
            const(w3.shape), const(b3.shape),
            const(w4p.shape), const(b4p.shape),
        ],
        out_specs=pl.BlockSpec((tb, out_pad), lambda i: (i, 0)),
        compiler_params=pltpu.CompilerParams(
            dimension_semantics=("parallel",),            # megacore on v7x
            vmem_limit_bytes=32 * 1024 * 1024),           # safe on v5e/v6e/v7x
        cost_estimate=pl.CostEstimate(
            flops=flops,
            transcendentals=3 * B * hidden,
            bytes_accessed=bytes_accessed),
    )(x2d, w1, b1, w2, b2, w3, b3, w4p, b4p)

    # slice off the lane padding; return f32 like the PyTorch module
    return out[:, :out_dim].astype(jnp.float32)


def init_params(key, input_dim, output_dim, internal_dim=16):
    """Deterministic init mimicking PyTorch nn.Linear default U(-1/sqrt(fan_in), +)."""
    dims = [(input_dim, internal_dim),
            (internal_dim, internal_dim),
            (internal_dim, internal_dim),
            (internal_dim, output_dim)]
    params = {}
    keys = jax.random.split(key, 2 * len(dims))
    for i, (fan_in, fan_out) in enumerate(dims):
        bound = 1.0 / math.sqrt(fan_in)
        params[f"w{i+1}"] = jax.random.uniform(
            keys[2 * i], (fan_in, fan_out), jnp.float32, -bound, bound)
        # bias kept 2D (1, fan_out) so it broadcasts cleanly on TPU vregs
        params[f"b{i+1}"] = jax.random.uniform(
            keys[2 * i + 1], (1, fan_out), jnp.float32, -bound, bound)
    return params


if __name__ == "__main__":
    key = jax.random.PRNGKey(0)
    k_x, k_p = jax.random.split(key)

    # Input: (batch=2, channels=4, 16, 16) -> input_dim = 4*16*16 = 1024
    B, C, H, W = 2, 4, 16, 16
    input_dim = C * H * W
    output_dim = 10
    internal_dim = 16

    x = jax.random.normal(k_x, (B, C, H, W), jnp.float32)
    params = init_params(k_p, input_dim, output_dim, internal_dim)

    out = mlp_forward(x, params)
    jax.block_until_ready(out)

    # Pure-JAX f32 reference. Kernel accumulates in f32 but stores the padded
    # output slab in bf16 (and MXU default precision may use reduced-precision
    # passes), so tolerance is kept at 2e-2.
    x2d = x.reshape(B, -1)
    h = jnp.tanh(x2d @ params["w1"] + params["b1"])
    h = jnp.tanh(h @ params["w2"] + params["b2"])
    h = jnp.tanh(h @ params["w3"] + params["b3"])
    ref = h @ params["w4"] + params["b4"]

    assert out.shape == (B, output_dim)
    assert jnp.allclose(out, ref, atol=2e-2, rtol=2e-2), (
        f"max abs err = {jnp.max(jnp.abs(out - ref))}")

    print("KERNEL_OK")
</pallas_src>

<mosaic_0001>
module attributes {stable_mosaic.version = 11 : i64} {
  func.func @mlp_kernel(%arg0: i32, %arg1: memref<2x1024xf32, #tpu.memory_space<vmem>>, %arg2: memref<1024x16xf32, #tpu.memory_space<vmem>>, %arg3: memref<1x16xf32, #tpu.memory_space<vmem>>, %arg4: memref<16x16xf32, #tpu.memory_space<vmem>>, %arg5: memref<1x16xf32, #tpu.memory_space<vmem>>, %arg6: memref<16x16xf32, #tpu.memory_space<vmem>>, %arg7: memref<1x16xf32, #tpu.memory_space<vmem>>, %arg8: memref<16x128xf32, #tpu.memory_space<vmem>>, %arg9: memref<1x128xf32, #tpu.memory_space<vmem>>, %arg10: memref<2x128xbf16, #tpu.memory_space<vmem>>) attributes {dimension_semantics = [#tpu.dimension_semantics<parallel>], iteration_bounds = array<i64: 1>, scalar_prefetch = 0 : i64, scratch_operands = 0 : i64, tpu.core_type = #tpu.core_type<tc>, window_params = [{transform_indices = @transform_0, window_bounds = array<i64: 2, 1024>}, {pipeline_mode = #tpu.pipeline_mode<synchronous>, transform_indices = @transform_1, window_bounds = array<i64: 1024, 16>}, {pipeline_mode = #tpu.pipeline_mode<synchronous>, transform_indices = @transform_2, window_bounds = array<i64: 1, 16>}, {pipeline_mode = #tpu.pipeline_mode<synchronous>, transform_indices = @transform_3, window_bounds = array<i64: 16, 16>}, {pipeline_mode = #tpu.pipeline_mode<synchronous>, transform_indices = @transform_4, window_bounds = array<i64: 1, 16>}, {pipeline_mode = #tpu.pipeline_mode<synchronous>, transform_indices = @transform_5, window_bounds = array<i64: 16, 16>}, {pipeline_mode = #tpu.pipeline_mode<synchronous>, transform_indices = @transform_6, window_bounds = array<i64: 1, 16>}, {pipeline_mode = #tpu.pipeline_mode<synchronous>, transform_indices = @transform_7, window_bounds = array<i64: 16, 128>}, {pipeline_mode = #tpu.pipeline_mode<synchronous>, transform_indices = @transform_8, window_bounds = array<i64: 1, 128>}, {transform_indices = @transform_9, window_bounds = array<i64: 2, 128>}]} {
    %c0 = arith.constant 0 : index
    %c0_0 = arith.constant 0 : index
    %0 = vector.load %arg1[%c0, %c0_0] : memref<2x1024xf32, #tpu.memory_space<vmem>>, vector<2x1024xf32>
    %c0_1 = arith.constant 0 : index
    %c0_2 = arith.constant 0 : index
    %1 = vector.load %arg2[%c0_1, %c0_2] : memref<1024x16xf32, #tpu.memory_space<vmem>>, vector<1024x16xf32>
    %cst = arith.constant dense<0.000000e+00> : vector<2x16xf32>
    %2 = tpu.matmul %0, %1, %cst {dimension_numbers = #tpu.dot_dimension_numbers<[1], [0], [0], [1], [0, 0, 1, 1], [], []>} : vector<2x1024xf32>, vector<1024x16xf32>, vector<2x16xf32> -> vector<2x16xf32>
    %c0_3 = arith.constant 0 : index
    %c0_4 = arith.constant 0 : index
    %3 = vector.load %arg3[%c0_3, %c0_4] : memref<1x16xf32, #tpu.memory_space<vmem>>, vector<1x16xf32>
    %4 = vector.broadcast %3 : vector<1x16xf32> to vector<2x16xf32>
    %5 = arith.addf %2, %4 : vector<2x16xf32>
    %6 = math.tanh %5 : vector<2x16xf32>
    %c0_5 = arith.constant 0 : index
    %c0_6 = arith.constant 0 : index
    %7 = vector.load %arg4[%c0_5, %c0_6] : memref<16x16xf32, #tpu.memory_space<vmem>>, vector<16x16xf32>
    %cst_7 = arith.constant dense<0.000000e+00> : vector<2x16xf32>
    %8 = tpu.matmul %6, %7, %cst_7 {dimension_numbers = #tpu.dot_dimension_numbers<[1], [0], [0], [1], [0, 0, 1, 1], [], []>} : vector<2x16xf32>, vector<16x16xf32>, vector<2x16xf32> -> vector<2x16xf32>
    %c0_8 = arith.constant 0 : index
    %c0_9 = arith.constant 0 : index
    %9 = vector.load %arg5[%c0_8, %c0_9] : memref<1x16xf32, #tpu.memory_space<vmem>>, vector<1x16xf32>
    %10 = vector.broadcast %9 : vector<1x16xf32> to vector<2x16xf32>
    %11 = arith.addf %8, %10 : vector<2x16xf32>
    %12 = math.tanh %11 : vector<2x16xf32>
    %c0_10 = arith.constant 0 : index
    %c0_11 = arith.constant 0 : index
    %13 = vector.load %arg6[%c0_10, %c0_11] : memref<16x16xf32, #tpu.memory_space<vmem>>, vector<16x16xf32>
    %cst_12 = arith.constant dense<0.000000e+00> : vector<2x16xf32>
    %14 = tpu.matmul %12, %13, %cst_12 {dimension_numbers = #tpu.dot_dimension_numbers<[1], [0], [0], [1], [0, 0, 1, 1], [], []>} : vector<2x16xf32>, vector<16x16xf32>, vector<2x16xf32> -> vector<2x16xf32>
    %c0_13 = arith.constant 0 : index
    %c0_14 = arith.constant 0 : index
    %15 = vector.load %arg7[%c0_13, %c0_14] : memref<1x16xf32, #tpu.memory_space<vmem>>, vector<1x16xf32>
    %16 = vector.broadcast %15 : vector<1x16xf32> to vector<2x16xf32>
    %17 = arith.addf %14, %16 : vector<2x16xf32>
    %18 = math.tanh %17 : vector<2x16xf32>
    %c0_15 = arith.constant 0 : index
    %c0_16 = arith.constant 0 : index
    %19 = vector.load %arg8[%c0_15, %c0_16] : memref<16x128xf32, #tpu.memory_space<vmem>>, vector<16x128xf32>
    %cst_17 = arith.constant dense<0.000000e+00> : vector<2x128xf32>
    %20 = tpu.matmul %18, %19, %cst_17 {dimension_numbers = #tpu.dot_dimension_numbers<[1], [0], [0], [1], [0, 0, 1, 1], [], []>} : vector<2x16xf32>, vector<16x128xf32>, vector<2x128xf32> -> vector<2x128xf32>
    %c0_18 = arith.constant 0 : index
    %c0_19 = arith.constant 0 : index
    %21 = vector.load %arg9[%c0_18, %c0_19] : memref<1x128xf32, #tpu.memory_space<vmem>>, vector<1x128xf32>
    %22 = vector.broadcast %21 : vector<1x128xf32> to vector<2x128xf32>
    %23 = arith.addf %20, %22 : vector<2x128xf32>
    %24 = arith.truncf %23 : vector<2x128xf32> to vector<2x128xbf16>
    %c0_20 = arith.constant 0 : index
    %c0_21 = arith.constant 0 : index
    %25 = vector.load %arg10[%c0_20, %c0_21] : memref<2x128xbf16, #tpu.memory_space<vmem>>, vector<2x128xbf16>
    tpu.vector_store %arg10[%c0_20, %c0_21], %24 {strides = array<i32>} : memref<2x128xbf16, #tpu.memory_space<vmem>>, vector<2x128xbf16>,
    return
  }
  func.func @transform_0(%arg0: i32) -> (i32, i32) {
    %c0_i32 = arith.constant 0 : i32
    %c0_i32_0 = arith.constant 0 : i32
    return %arg0, %c0_i32 : i32, i32
  }
  func.func @transform_1(%arg0: i32) -> (i32, i32) {
    %c0_i32 = arith.constant 0 : i32
    %c0_i32_0 = arith.constant 0 : i32
    %c0_i32_1 = arith.constant 0 : i32
    return %c0_i32, %c0_i32_0 : i32, i32
  }
  func.func @transform_2(%arg0: i32) -> (i32, i32) {
    %c0_i32 = arith.constant 0 : i32
    %c0_i32_0 = arith.constant 0 : i32
    %c0_i32_1 = arith.constant 0 : i32
    return %c0_i32, %c0_i32_0 : i32, i32
  }
  func.func @transform_3(%arg0: i32) -> (i32, i32) {
    %c0_i32 = arith.constant 0 : i32
    %c0_i32_0 = arith.constant 0 : i32
    %c0_i32_1 = arith.constant 0 : i32
    return %c0_i32, %c0_i32_0 : i32, i32
  }
  func.func @transform_4(%arg0: i32) -> (i32, i32) {
    %c0_i32 = arith.constant 0 : i32
    %c0_i32_0 = arith.constant 0 : i32
    %c0_i32_1 = arith.constant 0 : i32
    return %c0_i32, %c0_i32_0 : i32, i32
  }
  func.func @transform_5(%arg0: i32) -> (i32, i32) {
    %c0_i32 = arith.constant 0 : i32
    %c0_i32_0 = arith.constant 0 : i32
    %c0_i32_1 = arith.constant 0 : i32
    return %c0_i32, %c0_i32_0 : i32, i32
  }
  func.func @transform_6(%arg0: i32) -> (i32, i32) {
    %c0_i32 = arith.constant 0 : i32
    %c0_i32_0 = arith.constant 0 : i32
    %c0_i32_1 = arith.constant 0 : i32
    return %c0_i32, %c0_i32_0 : i32, i32
  }
  func.func @transform_7(%arg0: i32) -> (i32, i32) {
    %c0_i32 = arith.constant 0 : i32
    %c0_i32_0 = arith.constant 0 : i32
    %c0_i32_1 = arith.constant 0 : i32
    return %c0_i32, %c0_i32_0 : i32, i32
  }
  func.func @transform_8(%arg0: i32) -> (i32, i32) {
    %c0_i32 = arith.constant 0 : i32
    %c0_i32_0 = arith.constant 0 : i32
    %c0_i32_1 = arith.constant 0 : i32
    return %c0_i32, %c0_i32_0 : i32, i32
  }
  func.func @transform_9(%arg0: i32) -> (i32, i32) {
    %c0_i32 = arith.constant 0 : i32
    %c0_i32_0 = arith.constant 0 : i32
    return %arg0, %c0_i32 : i32, i32
  }
}

</mosaic_0001>

<bundles_post_ra>
// kernel: tpu_custom_call.1
= control target key start
LH: loop header
LB: loop body
LE: loop exit
PB: predicated region body
PF: predicated region fallthrough
CT: control target
= control target key end

     0   :  { %v1111_v47 = vmov 1983009808   ;;  %v176_v49 = vlaneseq  ;;  %s1615_s0 = inlined_call_operand.vmem [shape: f32[2,1024], index: 0, kind: input, shape index: {}]   ;;  %s1616_s1 = inlined_call_operand.vmem [shape: f32[1024,16], index: 1, kind: input, shape index: {}]   ;;  %s1617_s2 = inlined_call_operand.vmem [shape: f32[1,16], index: 2, kind: input, shape index: {}]   ;;  %s1618_s3 = inlined_call_operand.vmem [shape: f32[16,16], index: 3, kind: input, shape index: {}]   ;;  %s1619_s4 = inlined_call_operand.vmem [shape: f32[1,16], index: 4, kind: input, shape index: {}]   ;;  %s1620_s5 = inlined_call_operand.vmem [shape: f32[16,16], index: 5, kind: input, shape index: {}]   ;;  %s1621_s6 = inlined_call_operand.vmem [shape: f32[1,16], index: 6, kind: input, shape index: {}]   ;;  %s1622_s7 = inlined_call_operand.vmem [shape: f32[16,128], index: 7, kind: input, shape index: {}]   ;;  %s1623_s8 = inlined_call_operand.vmem [shape: f32[1,128], index: 8, kind: input, shape index: {}]   ;;  %s1624_s9 = inlined_call_operand.hbm [shape: bf16[2,128], index: 9, kind: output, shape index: {}]  }
   0x1   :  { %v51_v0 = vld [vmem:[%s1616_s1 + $0x80] sm:$0xff]  ;;  %v52_v1 = vld [vmem:[%s1616_s1 + $0x88] sm:$0xff]  ;;  %v53_v11 = vld [vmem:[%s1616_s1 + $0x90] sm:$0xff]  ;;  %v174_v48 = vunpack.c.l.s4 %v1111_v47 }
   0x2   :  { %v35_v2 = vld [vmem:[%s1616_s1] sm:$0xff]  ;;  %v937_v3 = vpack.c.bf16 %v52_v1, %v51_v0  ;;  %v36_v4 = vld [vmem:[%s1616_s1 + $0x8] sm:$0xff]  ;;  %v54_v13 = vld [vmem:[%s1616_s1 + $0x98] sm:$0xff]  ;;  %v177_v0 = vshrl.u32 %v176_v49, 7 }
   0x3   :  { %v83_v5 = vld [vmem:[%s1616_s1 + $0x180] sm:$0xff]  ;;  %v84_v6 = vld [vmem:[%s1616_s1 + $0x188] sm:$0xff]  ;;  %v939_v7 = vpack.c.bf16 %v36_v4, %v35_v2  ;;  %v37_v14 = vld [vmem:[%s1616_s1 + $0x10] sm:$0xff]  ;;  %v941_v16 = vpack.c.bf16 %v54_v13, %v53_v11  ;;  %v175_v63 = vunpack.c.0.s8 %v174_v48 }
   0x4   :  { %v969_v8 = vpack.c.bf16 %v84_v6, %v83_v5  ;;  %v67_v9 = vld [vmem:[%s1616_s1 + $0x100] sm:$0xff]  ;;  %v68_v10 = vld [vmem:[%s1616_s1 + $0x108] sm:$0xff]  ;;  %938 = vmatprep.subr.bf16.mxu0 %v937_v3  ;;  %v38_v15 = vld [vmem:[%s1616_s1 + $0x18] sm:$0xff] }
   0x5   :  { %v971_v12 = vpack.c.bf16 %v68_v10, %v67_v9  ;;  %940 = vmatpush3.bf16.msra.mxu0 %v939_v7  ;;  %v943_v17 = vpack.c.bf16 %v38_v15, %v37_v14  ;;  %v85_v18 = vld [vmem:[%s1616_s1 + $0x190] sm:$0xff]  ;;  %v86_v19 = vld [vmem:[%s1616_s1 + $0x198] sm:$0xff]  ;;  %v55_v23 = vld [vmem:[%s1616_s1 + $0xa0] sm:$0xff]  ;;  %v1316_v13 = vsub.s32 %v175_v63, %v177_v0 }
   0x6   :  { %970 = vmatprep.subr.bf16.mxu1 %v969_v8  ;;  %v69_v20 = vld [vmem:[%s1616_s1 + $0x110] sm:$0xff]  ;;  %v973_v21 = vpack.c.bf16 %v86_v19, %v85_v18  ;;  %v70_v22 = vld [vmem:[%s1616_s1 + $0x118] sm:$0xff]  ;;  %v56_v24 = vld [vmem:[%s1616_s1 + $0xa8] sm:$0xff]  ;;  %942 = vmatprep.subr.bf16.mxu0 %v941_v16 }
   0x7   :  { %972 = vmatpush3.bf16.msra.mxu1 %v971_v12  ;;  %v975_v25 = vpack.c.bf16 %v70_v22, %v69_v20  ;;  %v945_v26 = vpack.c.bf16 %v56_v24, %v55_v23  ;;  %v39_v27 = vld [vmem:[%s1616_s1 + $0x20] sm:$0xff]  ;;  %v40_v28 = vld [vmem:[%s1616_s1 + $0x28] sm:$0xff]  ;;  %v57_v35 = vld [vmem:[%s1616_s1 + $0xb0] sm:$0xff] }
   0x8   :  { %v87_v29 = vld [vmem:[%s1616_s1 + $0x1a0] sm:$0xff]  ;;  %974 = vmatprep.subr.bf16.mxu1 %v973_v21  ;;  %v88_v30 = vld [vmem:[%s1616_s1 + $0x1a8] sm:$0xff]  ;;  %v947_v33 = vpack.c.bf16 %v40_v28, %v39_v27  ;;  %v58_v36 = vld [vmem:[%s1616_s1 + $0xb8] sm:$0xff] }
   0x9   :  { %v71_v31 = vld [vmem:[%s1616_s1 + $0x120] sm:$0xff]  ;;  %v72_v32 = vld [vmem:[%s1616_s1 + $0x128] sm:$0xff]  ;;  %944 = vmatpush3.bf16.msra.mxu0 %v943_v17  ;;  %v977_v34 = vpack.c.bf16 %v88_v30, %v87_v29  ;;  %v41_v37 = vld [vmem:[%s1616_s1 + $0x30] sm:$0xff]  ;;  %v949_v39 = vpack.c.bf16 %v58_v36, %v57_v35 }
   0xa   :  { %946 = vmatprep.subr.bf16.mxu0 %v945_v26  ;;  %v979_v38 = vpack.c.bf16 %v72_v32, %v71_v31  ;;  %v42_v40 = vld [vmem:[%s1616_s1 + $0x38] sm:$0xff]  ;;  %v89_v41 = vld [vmem:[%s1616_s1 + $0x1b0] sm:$0xff]  ;;  %v59_v46 = vld [vmem:[%s1616_s1 + $0xc0] sm:$0xff] }
   0xb   :  { %976 = vmatpush3.bf16.msra.mxu1 %v975_v25  ;;  %v90_v42 = vld [vmem:[%s1616_s1 + $0x1b8] sm:$0xff]  ;;  %v73_v44 = vld [vmem:[%s1616_s1 + $0x130] sm:$0xff]  ;;  %v60_v50 = vld [vmem:[%s1616_s1 + $0xc8] sm:$0xff]  ;;  %v951_v51 = vpack.c.bf16 %v42_v40, %v41_v37 }
   0xc   :  { %978 = vmatprep.subr.bf16.mxu1 %v977_v34  ;;  %v981_v43 = vpack.c.bf16 %v90_v42, %v89_v41  ;;  %v74_v45 = vld [vmem:[%s1616_s1 + $0x138] sm:$0xff]  ;;  %v91_v52 = vld [vmem:[%s1616_s1 + $0x1c0] sm:$0xff]  ;;  %v92_v53 = vld [vmem:[%s1616_s1 + $0x1c8] sm:$0xff]  ;;  %v953_v55 = vpack.c.bf16 %v60_v50, %v59_v46 }
   0xd   :  { %948 = vmatpush3.bf16.msra.mxu0 %v947_v33  ;;  %v983_v54 = vpack.c.bf16 %v74_v45, %v73_v44  ;;  %v43_v56 = vld [vmem:[%s1616_s1 + $0x40] sm:$0xff]  ;;  %v44_v57 = vld [vmem:[%s1616_s1 + $0x48] sm:$0xff]  ;;  %v985_v59 = vpack.c.bf16 %v92_v53, %v91_v52  ;;  %v61_v61 = vld [vmem:[%s1616_s1 + $0xd0] sm:$0xff] }
   0xe   :  { %950 = vmatprep.subr.bf16.mxu0 %v949_v39  ;;  %v75_v58 = vld [vmem:[%s1616_s1 + $0x140] sm:$0xff]  ;;  %v76_v60 = vld [vmem:[%s1616_s1 + $0x148] sm:$0xff]  ;;  %v62_v62 = vld [vmem:[%s1616_s1 + $0xd8] sm:$0xff]  ;;  %v955_v3 = vpack.c.bf16 %v44_v57, %v43_v56 }
   0xf   :  { %980 = vmatpush3.bf16.msra.mxu1 %v979_v38  ;;  %v93_v1 = vld [vmem:[%s1616_s1 + $0x1d0] sm:$0xff]  ;;  %v94_v2 = vld [vmem:[%s1616_s1 + $0x1d8] sm:$0xff]  ;;  %v987_v4 = vpack.c.bf16 %v76_v60, %v75_v58  ;;  %v957_v5 = vpack.c.bf16 %v62_v62, %v61_v61  ;;  %v63_v11 = vld [vmem:[%s1616_s1 + $0xe0] sm:$0xff] }
  0x10   :  { %982 = vmatprep.subr.bf16.mxu1 %v981_v43  ;;  %v45_v6 = vld [vmem:[%s1616_s1 + $0x50] sm:$0xff]  ;;  %v46_v7 = vld [vmem:[%s1616_s1 + $0x58] sm:$0xff]  ;;  %v989_v9 = vpack.c.bf16 %v94_v2, %v93_v1  ;;  %v64_v12 = vld [vmem:[%s1616_s1 + $0xe8] sm:$0xff] }
  0x11   :  { %952 = vmatpush3.bf16.msra.mxu0 %v951_v51  ;;  %v77_v8 = vld [vmem:[%s1616_s1 + $0x150] sm:$0xff]  ;;  %v78_v10 = vld [vmem:[%s1616_s1 + $0x158] sm:$0xff]  ;;  %v95_v14 = vld [vmem:[%s1616_s1 + $0x1e0] sm:$0xff]  ;;  %v959_v16 = vpack.c.bf16 %v46_v7, %v45_v6  ;;  %v961_v19 = vpack.c.bf16 %v64_v12, %v63_v11 }
  0x12   :  { %954 = vmatprep.subr.bf16.mxu0 %v953_v55  ;;  %v96_v15 = vld [vmem:[%s1616_s1 + $0x1e8] sm:$0xff]  ;;  %v47_v17 = vld [vmem:[%s1616_s1 + $0x60] sm:$0xff]  ;;  %v991_v18 = vpack.c.bf16 %v78_v10, %v77_v8  ;;  %v65_v25 = vld [vmem:[%s1616_s1 + $0xf0] sm:$0xff] }
  0x13   :  { %984 = vmatpush3.bf16.msra.mxu1 %v983_v54  ;;  %v48_v20 = vld [vmem:[%s1616_s1 + $0x68] sm:$0xff]  ;;  %v79_v21 = vld [vmem:[%s1616_s1 + $0x160] sm:$0xff]  ;;  %v993_v23 = vpack.c.bf16 %v96_v15, %v95_v14  ;;  %v66_v26 = vld [vmem:[%s1616_s1 + $0xf8] sm:$0xff] }
  0x14   :  { %986 = vmatprep.subr.bf16.mxu1 %v985_v59  ;;  %v33_v22 = vld [vmem:[%s1615_s0] sm:$0xff]  ;;  %v80_v24 = vld [vmem:[%s1616_s1 + $0x168] sm:$0xff]  ;;  %v97_v29 = vld [vmem:[%s1616_s1 + $0x1f0] sm:$0xff]  ;;  %v963_v31 = vpack.c.bf16 %v48_v20, %v47_v17  ;;  %v965_v35 = vpack.c.bf16 %v66_v26, %v65_v25 }
  0x15   :  { %956 = vmatpush3.bf16.msra.mxu0 %v955_v3  ;;  %v179_v27 = vrot.slane %v33_v22, %v1316_v13  ;;  %v172_v28 = vcombine.high %v33_v22, %v33_v22  ;;  %v98_v30 = vld [vmem:[%s1616_s1 + $0x1f8] sm:$0xff]  ;;  %v995_v34 = vpack.c.bf16 %v80_v24, %v79_v21  ;;  %v49_v36 = vld [vmem:[%s1616_s1 + $0x70] sm:$0xff]  ;;  %v115_v41 = vld [vmem:[%s1616_s1 + $0x280] sm:$0xff] }
  0x16   :  { %958 = vmatprep.subr.bf16.mxu0 %v957_v5  ;;  %v50_v37 = vld [vmem:[%s1616_s1 + $0x78] sm:$0xff]  ;;  %v81_v38 = vld [vmem:[%s1616_s1 + $0x170] sm:$0xff]  ;;  %v997_v39 = vpack.c.bf16 %v98_v30, %v97_v29  ;;  %v116_v42 = vld [vmem:[%s1616_s1 + $0x288] sm:$0xff] }
  0x17   :  { %988 = vmatpush3.bf16.msra.mxu1 %v987_v4  ;;  %v187_v32 = vcombine.high %v179_v27, %v179_v27  ;;  %v186_v33 = vrot.slane %v172_v28, %v1316_v13  ;;  %v82_v40 = vld [vmem:[%s1616_s1 + $0x178] sm:$0xff]  ;;  %v147_v44 = vld [vmem:[%s1616_s1 + $0x380] sm:$0xff]  ;;  %v148_v45 = vld [vmem:[%s1616_s1 + $0x388] sm:$0xff]  ;;  %v967_v46 = vpack.c.bf16 %v50_v37, %v49_v36  ;;  %v1001_v48 = vpack.c.bf16 %v116_v42, %v115_v41 }
  0x18   :  { %990 = vmatprep.subr.bf16.mxu1 %v989_v9  ;;  %v999_v47 = vpack.c.bf16 %v82_v40, %v81_v38  ;;  %v99_v49 = vld [vmem:[%s1616_s1 + $0x200] sm:$0xff]  ;;  %v100_v50 = vld [vmem:[%s1616_s1 + $0x208] sm:$0xff]  ;;  %v1033_v52 = vpack.c.bf16 %v148_v45, %v147_v44  ;;  %v117_v54 = vld [vmem:[%s1616_s1 + $0x290] sm:$0xff] }
  0x19   :  { %960 = vmatpush3.bf16.msra.mxu0 %v959_v16  ;;  %278 = vmatprep.mubr.f32.mxu0 %v187_v32  ;;  %v188_v43 = vcombine.high %v186_v33, %v186_v33  ;;  %v131_v51 = vld [vmem:[%s1616_s1 + $0x300] sm:$0xff]  ;;  %v132_v53 = vld [vmem:[%s1616_s1 + $0x308] sm:$0xff]  ;;  %v118_v55 = vld [vmem:[%s1616_s1 + $0x298] sm:$0xff]  ;;  %v1003_v58 = vpack.c.bf16 %v100_v50, %v99_v49 }
  0x1a   :  { %962 = vmatprep.subr.bf16.mxu0 %v961_v19  ;;  %v149_v56 = vld [vmem:[%s1616_s1 + $0x390] sm:$0xff]  ;;  %v150_v57 = vld [vmem:[%s1616_s1 + $0x398] sm:$0xff]  ;;  %v1035_v59 = vpack.c.bf16 %v132_v53, %v131_v51  ;;  %v1005_v60 = vpack.c.bf16 %v118_v55, %v117_v54  ;;  %v119_v2 = vld [vmem:[%s1616_s1 + $0x2a0] sm:$0xff] }
  0x1b   :  { %992 = vmatpush3.bf16.msra.mxu1 %v991_v18  ;;  %348 = vmatprep.mubr.f32.mxu1 %v188_v43  ;;  %v101_v61 = vld [vmem:[%s1616_s1 + $0x210] sm:$0xff]  ;;  %v102_v62 = vld [vmem:[%s1616_s1 + $0x218] sm:$0xff]  ;;  %v1037_v0 = vpack.c.bf16 %v150_v57, %v149_v56  ;;  %v120_v3 = vld [vmem:[%s1616_s1 + $0x2a8] sm:$0xff] }
  0x1c   :  { %994 = vmatprep.subr.bf16.mxu1 %v993_v23  ;;  %v133_v63 = vld [vmem:[%s1616_s1 + $0x310] sm:$0xff]  ;;  %v134_v1 = vld [vmem:[%s1616_s1 + $0x318] sm:$0xff]  ;;  %v151_v4 = vld [vmem:[%s1616_s1 + $0x3a0] sm:$0xff]  ;;  %v1007_v6 = vpack.c.bf16 %v102_v62, %v101_v61  ;;  %v1009_v8 = vpack.c.bf16 %v120_v3, %v119_v2 }
  0x1d   :  { %964 = vmatpush3.bf16.msra.mxu0 %v963_v31  ;;  %v152_v5 = vld [vmem:[%s1616_s1 + $0x3a8] sm:$0xff]  ;;  %v1039_v7 = vpack.c.bf16 %v134_v1, %v133_v63  ;;  %v103_v9 = vld [vmem:[%s1616_s1 + $0x220] sm:$0xff]  ;;  %v121_v15 = vld [vmem:[%s1616_s1 + $0x2b0] sm:$0xff] }
  0x1e   :  { %966 = vmatprep.subr.bf16.mxu0 %v965_v35  ;;  %v104_v10 = vld [vmem:[%s1616_s1 + $0x228] sm:$0xff]  ;;  %v135_v11 = vld [vmem:[%s1616_s1 + $0x320] sm:$0xff]  ;;  %v1041_v12 = vpack.c.bf16 %v152_v5, %v151_v4  ;;  %v122_v16 = vld [vmem:[%s1616_s1 + $0x2b8] sm:$0xff] }
  0x1f   :  { %996 = vmatpush3.bf16.msra.mxu1 %v995_v34  ;;  %v136_v14 = vld [vmem:[%s1616_s1 + $0x328] sm:$0xff]  ;;  %v153_v17 = vld [vmem:[%s1616_s1 + $0x3b0] sm:$0xff]  ;;  %v154_v18 = vld [vmem:[%s1616_s1 + $0x3b8] sm:$0xff]  ;;  %v1011_v19 = vpack.c.bf16 %v104_v10, %v103_v9  ;;  %v1013_v22 = vpack.c.bf16 %v122_v16, %v121_v15 }
  0x20   :  { %998 = vmatprep.subr.bf16.mxu1 %v997_v39  ;;  %v105_v20 = vld [vmem:[%s1616_s1 + $0x230] sm:$0xff]  ;;  %v1043_v21 = vpack.c.bf16 %v136_v14, %v135_v11  ;;  %v106_v23 = vld [vmem:[%s1616_s1 + $0x238] sm:$0xff]  ;;  %v1045_v26 = vpack.c.bf16 %v154_v18, %v153_v17  ;;  %v124_v28 = vld [vmem:[%s1616_s1 + $0x2c8] sm:$0xff] }
  0x21   :  { %968 = vmatpush3.bf16.msra.mxu0 %v967_v46  ;;  %v137_v24 = vld [vmem:[%s1616_s1 + $0x330] sm:$0xff]  ;;  %v138_v25 = vld [vmem:[%s1616_s1 + $0x338] sm:$0xff]  ;;  %v155_v29 = vld [vmem:[%s1616_s1 + $0x3c0] sm:$0xff] }
  0x22   :  { %1002 = vmatprep.subr.bf16.mxu0 %v1001_v48  ;;  %v156_v30 = vld [vmem:[%s1616_s1 + $0x3c8] sm:$0xff] }
  0x23   :  { %1000 = vmatpush3.bf16.msra.mxu1 %v999_v47  ;;  %v34_v31 = vld [vmem:[%s1615_s0 + $0x8] sm:$0xff] }
  0x24   :  { %1034 = vmatprep.subr.bf16.mxu1 %v1033_v52  ;;  %279 = vmatmul.mubr.f32.vlgmr.msra.gmra.mrb[0].mxu0 %v179_v27  ;;  %v123_v27 = vld [vmem:[%s1616_s1 + $0x2c0] sm:$0xff] }
  0x25   :  { %1004 = vmatpush3.bf16.msra.mxu0 %v1003_v58 }
  0x26   :  { %349 = vmatmul.mubr.f32.vlgmr.msra.gmra.mrb[0].mxu1 %v186_v33  ;;  %1006 = vmatprep.subr.bf16.mxu0 %v1005_v60 }
  0x27   :  { %1036 = vmatpush3.bf16.msra.mxu1 %v1035_v59 }
  0x28   :  { %1038 = vmatprep.subr.bf16.mxu1 %v1037_v0 }
  0x29   :  { %1008 = vmatpush3.bf16.msra.mxu0 %v1007_v6 }
  0x2a   :  { %1010 = vmatprep.subr.bf16.mxu0 %v1009_v8 }
  0x2b   :  { %1040 = vmatpush3.bf16.msra.mxu1 %v1039_v7 }
  0x2c   :  { %1042 = vmatprep.subr.bf16.mxu1 %v1041_v12 }
  0x2d   :  { %14 = vsyncpa [#allocation3], 0  ;;  %1012 = vmatpush3.bf16.msra.mxu0 %v1011_v19  ;;  %v1015_v32 = vpack.c.bf16 %v106_v23, %v105_v20  ;;  %v1477_v33 = vrot.slane %v34_v31, %v1316_v13  ;;  %v189_v34 = vcombine.high %v34_v31, %v34_v31  ;;  %v1047_v35 = vpack.c.bf16 %v138_v25, %v137_v24  ;;  %v107_v37 = vld [vmem:[%s1616_s1 + $0x240] sm:$0xff]  ;;  %v108_v38 = vld [vmem:[%s1616_s1 + $0x248] sm:$0xff]  ;;  %s1115_s28 = smov [#allocation2]  }
  0x2e   :  { %1014 = vmatprep.subr.bf16.mxu0 %v1013_v22  ;;  %v1017_v36 = vpack.c.bf16 %v124_v28, %v123_v27  ;;  %v139_v39 = vld [vmem:[%s1616_s1 + $0x340] sm:$0xff]  ;;  %v1049_v40 = vpack.c.bf16 %v156_v30, %v155_v29  ;;  %v140_v41 = vld [vmem:[%s1616_s1 + $0x348] sm:$0xff]  ;;  %v125_v42 = vld [vmem:[%s1616_s1 + $0x2d0] sm:$0xff]  ;;  %v1019_v48 = vpack.c.bf16 %v108_v38, %v107_v37  ;;  %vm1113_vm0 = vmmov 0  }
  0x2f   :  { %1044 = vmatpush3.bf16.msra.mxu1 %v1043_v21  ;;  %v126_v43 = vld [vmem:[%s1616_s1 + $0x2d8] sm:$0xff]  ;;  %v204_v44 = vcombine.high %v1477_v33, %v1477_v33  ;;  %v203_v45 = vrot.slane %v189_v34, %v1316_v13  ;;  %v157_v46 = vld [vmem:[%s1616_s1 + $0x3d0] sm:$0xff]  ;;  %v1051_v50 = vpack.c.bf16 %v140_v41, %v139_v39  ;;  %v127_v56 = vld [vmem:[%s1616_s1 + $0x2e0] sm:$0xff]  ;;  %v1112_v21 = vmov 0.0|0.0  }
  0x30   :  { %1046 = vmatprep.subr.bf16.mxu1 %v1045_v26  ;;  %v158_v47 = vld [vmem:[%s1616_s1 + $0x3d8] sm:$0xff]  ;;  %v1021_v51 = vpack.c.bf16 %v126_v43, %v125_v42  ;;  %v109_v13 = vld [vmem:[%s1616_s1 + $0x250] sm:$0xff]  ;;  %v128_v57 = vld [vmem:[%s1616_s1 + $0x2e8] sm:$0xff]  ;;  %v1114_v23 = vmov 0.0   ;;  %vm504_vm1 = vcmask 130048  }
  0x31   :  { %1016 = vmatpush3.bf16.msra.mxu0 %v1015_v32  ;;  %418 = vmatprep.mubr.f32.mxu0 %v204_v44  ;;  %v205_v49 = vcombine.high %v203_v45, %v203_v45  ;;  %v110_v52 = vld [vmem:[%s1616_s1 + $0x258] sm:$0xff]  ;;  %v141_v53 = vld [vmem:[%s1616_s1 + $0x350] sm:$0xff]  ;;  %v1053_v54 = vpack.c.bf16 %v158_v47, %v157_v46  ;;  %v159_v58 = vld [vmem:[%s1616_s1 + $0x3e0] sm:$0xff]  ;;  %v1025_v62 = vpack.c.bf16 %v128_v57, %v127_v56 }
  0x32   :  { %1018 = vmatprep.subr.bf16.mxu0 %v1017_v36  ;;  %v142_v55 = vld [vmem:[%s1616_s1 + $0x358] sm:$0xff]  ;;  %v160_v59 = vld [vmem:[%s1616_s1 + $0x3e8] sm:$0xff]  ;;  %v1023_v60 = vpack.c.bf16 %v110_v52, %v109_v13  ;;  %v111_v63 = vld [vmem:[%s1616_s1 + $0x260] sm:$0xff] }
  0x33   :  { %1048 = vmatpush3.bf16.msra.mxu1 %v1047_v35  ;;  %488 = vmatprep.mubr.f32.mxu1 %v205_v49  ;;  %v1055_v61 = vpack.c.bf16 %v142_v55, %v141_v53  ;;  %v112_v0 = vld [vmem:[%s1616_s1 + $0x268] sm:$0xff]  ;;  %v143_v1 = vld [vmem:[%s1616_s1 + $0x360] sm:$0xff]  ;;  %v1057_v2 = vpack.c.bf16 %v160_v59, %v159_v58  ;;  %v129_v4 = vld [vmem:[%s1616_s1 + $0x2f0] sm:$0xff] }
  0x34   :  { %1050 = vmatprep.subr.bf16.mxu1 %v1049_v40  ;;  %v144_v3 = vld [vmem:[%s1616_s1 + $0x368] sm:$0xff]  ;;  %v130_v5 = vld [vmem:[%s1616_s1 + $0x2f8] sm:$0xff]  ;;  %v161_v6 = vld [vmem:[%s1616_s1 + $0x3f0] sm:$0xff]  ;;  %v1027_v8 = vpack.c.bf16 %v112_v0, %v111_v63 }
  0x35   :  { %1020 = vmatpush3.bf16.msra.mxu0 %v1019_v48  ;;  %v162_v7 = vld [vmem:[%s1616_s1 + $0x3f8] sm:$0xff]  ;;  %v1059_v9 = vpack.c.bf16 %v144_v3, %v143_v1  ;;  %v1029_v10 = vpack.c.bf16 %v130_v5, %v129_v4  ;;  %v113_v11 = vld [vmem:[%s1616_s1 + $0x270] sm:$0xff]  ;;  %v495_v19 = vld [vmem:[%s1618_s3] sm:$0xff] }
  0x36   :  { %1022 = vmatprep.subr.bf16.mxu0 %v1021_v51  ;;  %v114_v12 = vld [vmem:[%s1616_s1 + $0x278] sm:$0xff]  ;;  %v1061_v14 = vpack.c.bf16 %v162_v7, %v161_v6  ;;  %v145_v15 = vld [vmem:[%s1616_s1 + $0x370] sm:$0xff]  ;;  %v496_v20 = vld [vmem:[%s1618_s3 + $0x8] sm:$0xff] }
  0x37   :  { %1052 = vmatpush3.bf16.msra.mxu1 %v1051_v50  ;;  %v146_v16 = vld [vmem:[%s1616_s1 + $0x378] sm:$0xff]  ;;  %v1031_v17 = vpack.c.bf16 %v114_v12, %v113_v11  ;;  %v1066_v22 = vpack.c.bf16 %v496_v20, %v495_v19  ;;  %v760_v25 = vld [vmem:[%s1617_s2] ss:$0 sm:$0xff]  ;;  %v580_v43 = vld [vmem:[%s1620_s5 + $0x8] sm:$0xff] }
  0x38   :  { %1054 = vmatprep.subr.bf16.mxu1 %v1053_v54  ;;  %v1063_v18 = vpack.c.bf16 %v146_v16, %v145_v15  ;;  %v579_v42 = vld [vmem:[%s1620_s5] sm:$0xff]  ;;  %v663_v51 = vld [vmem:[%s1622_s7 + $0x8] sm:$0xff] }
  0x39   :  { %1024 = vmatpush3.bf16.msra.mxu0 %v1023_v60  ;;  %v1069_v44 = vpack.c.bf16 %v580_v43, %v579_v42  ;;  %v662_v50 = vld [vmem:[%s1622_s7] sm:$0xff]  ;;  %s752_s7 = sshll.u32 %s1115_s28, 4  ;;  %s753_s7 = int_to_ptr.vmem [resolvable:$true] %s752_s7 }
  0x3a   :  { %1026 = vmatprep.subr.bf16.mxu0 %v1025_v62  ;;  %v1072_v13 = vpack.c.bf16 %v663_v51, %v662_v50  ;;  %v763_v52 = vld [vmem:[%s1621_s6] ss:$0 sm:$0xff]  ;;  %s1087_s6 = scalar_lea.vmem %s753_s7, 16  ;;  %s1091_s29 = scalar_lea.vmem %s753_s7, 32 }
  0x3b   :  { %1056 = vmatpush3.bf16.msra.mxu1 %v1055_v61  ;;  %v765_v57 = vld [vmem:[%s1623_s8] ss:$0 sm:$0xff]  ;;  %p1088_p0 = scmp.ne.s32.totalorder %s753_s7, %s1087_s6  ;;  %p1092_p1 = scmp.lt.s32.totalorder %s753_s7, %s753_s7 }
  0x3c   :  { %1058 = vmatprep.subr.bf16.mxu1 %v1057_v2  ;;  %p1093_p2 = scmp.lt.s32.totalorder %s1091_s29, %s1087_s6 }
  0x3d   :  { %1028 = vmatpush3.bf16.msra.mxu0 %v1027_v8 }
  0x3e   :  { %1030 = vmatprep.subr.bf16.mxu0 %v1029_v10  ;;  %p1094_p3 = por %p1093_p2, %p1092_p1 }
  0x3f   :  { %1060 = vmatpush3.bf16.msra.mxu1 %v1059_v9 }
  0x40   :  { %1062 = vmatprep.subr.bf16.mxu1 %v1061_v14  ;;  %p1095_p4 = pnand %p1094_p3, %p1088_p0 }
  0x41   :  { %1032 = vmatpush3.bf16.msra.mxu0 %v1031_v17 }
  0x42   :  { %1065 = vmatprep.subr.bf16.mxu0 %v1112_v21 }
  0x43   :  { %1064 = vmatpush3.bf16.msra.mxu1 %v1063_v18 }
  0x44   :  { %419 = vmatmul.mubr.f32.vlgmr.msra.gmra.mrb[2].mxu0 %v1477_v33  ;;  %1068 = vmatprep.subr.bf16.mxu1 %v1112_v21 }
  0x45   :  { %920 = vmatprep.mubr.msk.f32.mxu0 %vm1113_vm0, %v1114_v23  ;;  %1067 = vmatpush3.bf16.msra.mxu0 %v1066_v22 }
  0x46   :  { %489 = vmatmul.mubr.f32.vlgmr.msra.gmra.mrb[2].mxu1 %v203_v45  ;;  %1071 = vmatprep.subr.bf16.mxu0 %v1112_v21  ;;  %v761_v45 = vld [vmem:[%s1619_s4] ss:$0 sm:$0xff] }
  0x47   :  { %927 = vmatprep.mubr.msk.f32.mxu1 %vm1113_vm0, %v1114_v23  ;;  %1070 = vmatpush3.bf16.msra.mxu1 %v1069_v44 }
  0xf7   :  { %v799_v24 = vpop.f32.mrb[0].mxu0 }
  0xf8   :  { %v800_v26 = vpop.f32.mrb[1].mxu0 }
  0xf9   :  { %v834_v27 = vpop.f32.mrb[0].mxu1  ;;  %v801_v28 = vadd.f32 %v800_v26, %v799_v24 }
  0xfa   :  { %v835_v29 = vpop.f32.mrb[1].mxu1 }
  0xfb   :  { %v836_v30 = vadd.f32 %v835_v29, %v834_v27  ;;  %v281_v31 = vadd.f32 %v801_v28, %v760_v25 }
  0xfd   :  { %v351_v32 = vadd.f32 %v836_v30, %v281_v31 }
 0x117   :  { %v869_v33 = vpop.f32.mrb[2].mxu0 }
 0x118   :  { %v870_v34 = vpop.f32.mrb[3].mxu0 }
 0x119   :  { %v904_v35 = vpop.f32.mrb[2].mxu1  ;;  %v871_v36 = vadd.f32 %v870_v34, %v869_v33 }
 0x11a   :  { %v905_v37 = vpop.f32.mrb[3].mxu1 }
 0x11b   :  { %v906_v38 = vadd.f32 %v905_v37, %v904_v35  ;;  %v421_v39 = vadd.f32 %v871_v36, %v351_v32 }
 0x11d   :  { %v491_v40 = vadd.f32 %v906_v38, %v421_v39 }
 0x11f   :  { %1081 = vtanh.f32 %v491_v40 }
 0x129   :  { %v1082_v41 = vpop.eup %1081 }
 0x12a   :  { %921 = vmatmul.mubr.msk.f32.vlgmr.msra.gmra.mrb[4].mxu0 %vm504_vm1, %v1082_v41 }
 0x12b   :  { %934 = vmatprep.mubr.msk.f32.mxu0 %vm1113_vm0, %v1114_v23  ;;  %1073 = vmatpush3.bf16.msra.mxu0 %v1072_v13 }
 0x1fd   :  { %v574_v46 = vpop.f32.mrb[4].mxu0 }
 0x1fe   :  { %v575_v47 = vadd.f32 %v761_v45, %v574_v46  ;;  %v922_v48 = vpop.f32.mrb[5].mxu0 }
 0x200   :  { %1083 = vtanh.f32 %v575_v47 }
 0x20a   :  { %v1084_v49 = vpop.eup %1083 }
 0x20b   :  { %928 = vmatmul.mubr.msk.f32.vlgmr.msra.gmra.mrb[4].mxu1 %vm504_vm1, %v1084_v49 }
 0x2de   :  { %v657_v53 = vpop.f32.mrb[4].mxu1 }
 0x2df   :  { %v658_v54 = vadd.f32 %v763_v52, %v657_v53  ;;  %v929_v55 = vpop.f32.mrb[5].mxu1 }
 0x2e1   :  { %1085 = vtanh.f32 %v658_v54 }
 0x2eb   :  { %v1086_v56 = vpop.eup %1085 }
 0x2ec   :  { %935 = vmatmul.mubr.msk.f32.vlgmr.msra.gmra.mrb[6].mxu0 %vm504_vm1, %v1086_v56 }
 0x3bf   :  { %v740_v58 = vpop.f32.mrb[6].mxu0 }
 0x3c0   :  { %v741_v59 = vadd.f32 %v765_v57, %v740_v58  ;;  %v936_v60 = vpop.f32.mrb[7].mxu0 }
 0x3c2   :  { %v744_v61 = vpack.c.bf16 %v741_v59, %v741_v59 }
 0x3c4   :  { %745 = vst [vmem:[#allocation2] sm:$0x1] %v744_v61 }
 0x3c5   :  { %1098 = shalt.err (!%p1095_p4)
}
 0x3c6   :  { %s1099_s8 = scalar_lea.hbm %s1624_s9, 16 }
 0x3c7   :  { %p1100_p5 = scmp.ne.s32.totalorder %s1624_s9, %s1099_s8  ;;  %p1103_p6 = scmp.lt.u32.totalorder %s1099_s8, %s1624_s9 }
 0x3c9   :  { %p1105_p7 = pnand %p1103_p6, %p1100_p5 }
 0x3cb   :  { %1108 = shalt.err (!%p1105_p7)
}
 0x3cc   :  { %755 = dma.vmem_to_hbm [thread:$0]  %s753_s7, 16, %s1624_s9, [#allocation3]  }
 0x3cd   :  { %1109 = dma.done.wait [#allocation3], 16  }
 0x3ce   :  { %1110 = vsyncadd [#allocation3], 4294967280 }
 0x3cf   :  { %759 = vsyncpa [#allocation3], 1 }

</bundles_post_ra>
